<compile_context>
chip_gen: v7x
topology: tpu7x:2x2x1
jax: 0.10.0
libtpu: 0.0.40
codegen_flags: <defaults>
</compile_context>

<pallas_src>
import functools

import jax
import jax.numpy as jnp
from jax.experimental import pallas as pl
from jax.experimental.pallas import tpu as pltpu


def _round_up(v: int, m: int) -> int:
    return (v + m - 1) // m * m


def _global_sa_kernel(feat_ref, w1_ref, b1_ref, w2_ref, b2_ref, out_ref, *,
                      num_segments: int, id_col: int):
    """Fused MLP + running segment-max over one tile of points.

    feat_ref : [T, C_in+1]  x | pos | batch-id-as-value (padding rows id = -1)
    w1_ref   : [C_in+1, H_pad]  (zero row for the id column)
    b1_ref   : [1, H_pad]  f32
    w2_ref   : [H_pad, D_pad]
    b2_ref   : [1, D_pad]  f32
    out_ref  : [B_pad, D_pad]  VMEM-resident running-max accumulator (per split)
    """
    # Initialize the resident accumulator once per split (start of reduction axis).
    @pl.when(pl.program_id(1) == 0)
    def _init():
        out_ref[...] = jnp.full(out_ref.shape, -jnp.inf, out_ref.dtype)

    ft = feat_ref[...]                                       # [T, C_in+1]
    ids = ft[:, id_col:id_col + 1].astype(jnp.int32)         # [T, 1]

    # Layer 1: one dot covers concat([x, pos]); the id column multiplies a
    # zero weight row so it contributes nothing.
    h = jnp.dot(ft, w1_ref[...], preferred_element_type=jnp.float32)
    h = jnp.maximum(h + b1_ref[...], 0.0)                    # [T, H_pad] f32

    # Layer 2: Linear + ReLU.
    y = jnp.dot(h.astype(w2_ref.dtype), w2_ref[...],
                preferred_element_type=jnp.float32)
    y = jnp.maximum(y + b2_ref[...], 0.0)                    # [T, D_pad] f32

    # Segment max for this tile: hoisted -inf filler, row-wise in-place update
    # of the resident accumulator (no concatenate).  Padding rows (id == -1)
    # never match any segment.
    neg = jnp.full_like(y, -jnp.inf)
    for b in range(num_segments):
        seg = jnp.max(jnp.where(ids == b, y, neg), axis=0)   # [D_pad]
        out_ref[b, :] = jnp.maximum(out_ref[b, :], seg)


def global_sa_module(x, pos, batch, params, num_segments, *,
                     tile_n=2048, num_splits=1,
                     compute_dtype=jnp.float32,
                     weight_buffer_count=None,
                     vmem_limit_mb=32):
    """JAX wrapper reproducing GlobalSAModule.forward.

    x:     [N, C_x] float32
    pos:   [N, 3]   float32
    batch: [N]      int    segment ids in [0, num_segments)
    params = (w1 [C_x+3, H], b1 [1, H], w2 [H, D_out], b2 [1, D_out])
    Returns (x_out [B, D_out], pos_out [B, 3], batch_out [B]).

    Tuning: num_splits=1 on v5e/v6e (single TensorCore), 2 on v7x;
    weight_buffer_count=1 on v7x to single-buffer grid-invariant weights;
    compute_dtype=jnp.bfloat16 for MXU-native matmuls (f32 accumulate kept).
    """
    w1, b1, w2, b2 = params
    n, c_x = x.shape
    d_in, hidden = w1.shape
    d_out = w2.shape[1]
    assert d_in == c_x + 3, "w1 must act on concat([x, pos])"
    if compute_dtype == jnp.bfloat16:
        # Batch ids are carried as numeric values in the fused stream; bf16
        # represents integers exactly only up to 256.
        assert num_segments <= 256, "use compute_dtype=float32 for B > 256"

    c_fused = d_in + 1          # x | pos | batch-id column

    # ---- lane-dense channel padding (multiples of 128) ---------------------
    h_pad = _round_up(hidden, 128)
    d_pad = _round_up(d_out, 128)
    b_pad = _round_up(num_segments, 8)        # sublane-dense accumulator rows

    w1_full = jnp.concatenate([w1, jnp.zeros((1, hidden), w1.dtype)], axis=0)
    w1_p = jnp.pad(w1_full, ((0, 0), (0, h_pad - hidden))).astype(compute_dtype)
    b1_p = jnp.pad(b1, ((0, 0), (0, h_pad - hidden))).astype(jnp.float32)
    w2_p = jnp.pad(w2, ((0, h_pad - hidden), (0, d_pad - d_out))).astype(compute_dtype)
    b2_p = jnp.pad(b2, ((0, 0), (0, d_pad - d_out))).astype(jnp.float32)

    # ---- N tiling: optional split across cores, then tile each split -------
    per_split = max(_round_up(pl.cdiv(n, num_splits), 8), 8)
    tile = min(_round_up(tile_n, 8), per_split)
    tiles_per_split = pl.cdiv(per_split, tile)
    per_split = tiles_per_split * tile
    n_pad = per_split * num_splits

    # Fused input stream: [x | pos | batch-id]; padding rows carry id == -1.
    pad_rows = n_pad - n
    x_p = jnp.pad(x, ((0, pad_rows), (0, 0)))
    pos_p = jnp.pad(pos, ((0, pad_rows), (0, 0)))
    ids_col = jnp.pad(batch.astype(jnp.float32)[:, None],
                      ((0, pad_rows), (0, 0)), constant_values=-1.0)
    fused = jnp.concatenate([x_p, pos_p, ids_col], axis=1).astype(compute_dtype)

    def row_map(s, i):
        return (s * tiles_per_split + i, 0)

    def const_map(s, i):
        return (0, 0)

    # Grid-invariant weight/bias blocks; optionally single-buffered (v7x).
    weight_mode = (pl.Buffered(weight_buffer_count)
                   if weight_buffer_count is not None else None)

    def const_spec(shape):
        if weight_mode is None:
            return pl.BlockSpec(shape, const_map)
        return pl.BlockSpec(shape, const_map, pipeline_mode=weight_mode)

    kernel = functools.partial(_global_sa_kernel,
                               num_segments=num_segments, id_col=d_in)

    itemsize = jnp.dtype(compute_dtype).itemsize
    flops = 2 * n_pad * (c_fused * h_pad + h_pad * d_pad)
    bytes_accessed = (n_pad * c_fused * itemsize
                      + (c_fused * h_pad + h_pad * d_pad) * itemsize
                      + (h_pad + d_pad) * 4
                      + num_splits * b_pad * d_pad * 4)

    out = pl.pallas_call(
        kernel,
        out_shape=jax.ShapeDtypeStruct((num_splits, b_pad, d_pad), jnp.float32),
        grid=(num_splits, tiles_per_split),
        in_specs=[
            pl.BlockSpec((tile, c_fused), row_map),     # fused point tile
            const_spec((c_fused, h_pad)),               # W1 (invariant)
            const_spec((1, h_pad)),                     # b1
            const_spec((h_pad, d_pad)),                 # W2
            const_spec((1, d_pad)),                     # b2
        ],
        out_specs=pl.BlockSpec((None, b_pad, d_pad),
                               lambda s, i: (s, 0, 0)),  # resident per split
        compiler_params=pltpu.CompilerParams(
            dimension_semantics=("parallel", "arbitrary"),
            vmem_limit_bytes=vmem_limit_mb * 1024 * 1024),
        cost_estimate=pl.CostEstimate(flops=flops, transcendentals=0,
                                      bytes_accessed=bytes_accessed),
    )(fused, w1_p, b1_p, w2_p, b2_p)

    # Combine per-split partial maxes (no-op reduce when num_splits == 1),
    # drop sublane/lane padding.
    combined = out[0] if num_splits == 1 else jnp.max(out, axis=0)
    x_out = combined[:num_segments, :d_out]                       # [B, D_out]
    pos_out = jnp.zeros((num_segments, 3), dtype=pos.dtype)
    batch_out = jnp.arange(num_segments, dtype=jnp.int32)
    return x_out, pos_out, batch_out


def _init_mlp_params(key, d_in, hidden, d_out):
    """Deterministic synthetic init for the `nn` MLP (Linear->ReLU->Linear->ReLU)."""
    k1, k2 = jax.random.split(key)
    w1 = jax.random.normal(k1, (d_in, hidden), jnp.float32) * 0.1
    b1 = jnp.zeros((1, hidden), jnp.float32)
    w2 = jax.random.normal(k2, (hidden, d_out), jnp.float32) * 0.1
    b2 = jnp.zeros((1, d_out), jnp.float32)
    return w1, b1, w2, b2


def _reference(x, pos, batch, params, num_segments):
    """Pure-JAX reference for correctness checking."""
    w1, b1, w2, b2 = params
    feat = jnp.concatenate([x, pos], axis=1)
    h = jnp.maximum(feat @ w1 + b1, 0.0)
    y = jnp.maximum(h @ w2 + b2, 0.0)
    mask = batch[:, None] == jnp.arange(num_segments)[None, :]       # [N, B]
    masked = jnp.where(mask.T[:, :, None], y[None, :, :], -jnp.inf)  # [B, N, D]
    return jnp.max(masked, axis=1)


if __name__ == "__main__":
    key = jax.random.PRNGKey(0)
    kx, kp, kparam, kx2, kp2 = jax.random.split(key, 5)

    # ---- case 1: small shapes (N=16, C_x=4, B=2, MLP 7 -> 32 -> 64) --------
    N, C_X, B, HIDDEN, D_OUT = 16, 4, 2, 32, 64
    x = jax.random.normal(kx, (N, C_X), jnp.float32)
    pos = jax.random.normal(kp, (N, 3), jnp.float32)
    batch = jnp.concatenate([jnp.zeros(N // 2, jnp.int32),
                             jnp.ones(N - N // 2, jnp.int32)])
    params = _init_mlp_params(kparam, C_X + 3, HIDDEN, D_OUT)

    x_out, pos_out, batch_out = global_sa_module(x, pos, batch, params, B)
    jax.block_until_ready((x_out, pos_out, batch_out))

    ref = _reference(x, pos, batch, params, B)
    assert x_out.shape == (B, D_OUT)
    assert pos_out.shape == (B, 3)
    assert batch_out.shape == (B,)
    assert jnp.allclose(x_out, ref, atol=1e-4, rtol=1e-4)
    assert jnp.all(pos_out == 0.0)
    assert jnp.array_equal(batch_out, jnp.arange(B, dtype=jnp.int32))

    # ---- case 2: multi-tile grid, two splits, N-padding, uneven segments ---
    N2, B2 = 200, 3
    x2 = jax.random.normal(kx2, (N2, C_X), jnp.float32)
    pos2 = jax.random.normal(kp2, (N2, 3), jnp.float32)
    batch2 = jnp.concatenate([jnp.full(70, 0, jnp.int32),
                              jnp.full(60, 1, jnp.int32),
                              jnp.full(70, 2, jnp.int32)])
    x2_out, pos2_out, batch2_out = global_sa_module(
        x2, pos2, batch2, params, B2, tile_n=64, num_splits=2)
    jax.block_until_ready((x2_out, pos2_out, batch2_out))

    ref2 = _reference(x2, pos2, batch2, params, B2)
    assert x2_out.shape == (B2, D_OUT)
    assert jnp.allclose(x2_out, ref2, atol=1e-4, rtol=1e-4)
    assert jnp.all(pos2_out == 0.0)
    assert jnp.array_equal(batch2_out, jnp.arange(B2, dtype=jnp.int32))

    # ---- case 3: bf16 compute path (MXU-native), loose tolerance -----------
    x3_out, _, _ = global_sa_module(
        x2, pos2, batch2, params, B2, compute_dtype=jnp.bfloat16)
    jax.block_until_ready(x3_out)
    assert x3_out.shape == (B2, D_OUT)
    assert jnp.allclose(x3_out, ref2, atol=5e-2, rtol=5e-2)

    print("KERNEL_OK")
</pallas_src>

<mosaic_0001>
module attributes {stable_mosaic.version = 11 : i64} {
  func.func @_global_sa_kernel(%arg0: i32, %arg1: i32, %arg2: memref<16x8xf32, #tpu.memory_space<vmem>>, %arg3: memref<8x128xf32, #tpu.memory_space<vmem>>, %arg4: memref<1x128xf32, #tpu.memory_space<vmem>>, %arg5: memref<128x128xf32, #tpu.memory_space<vmem>>, %arg6: memref<1x128xf32, #tpu.memory_space<vmem>>, %arg7: memref<1x8x128xf32, #tpu.memory_space<vmem>>) attributes {dimension_semantics = [#tpu.dimension_semantics<parallel>, #tpu.dimension_semantics<arbitrary>], iteration_bounds = array<i64: 1, 1>, scalar_prefetch = 0 : i64, scratch_operands = 0 : i64, tpu.core_type = #tpu.core_type<tc>, window_params = [{transform_indices = @transform_0, window_bounds = array<i64: 16, 8>}, {pipeline_mode = #tpu.pipeline_mode<synchronous>, transform_indices = @transform_1, window_bounds = array<i64: 8, 128>}, {pipeline_mode = #tpu.pipeline_mode<synchronous>, transform_indices = @transform_2, window_bounds = array<i64: 1, 128>}, {pipeline_mode = #tpu.pipeline_mode<synchronous>, transform_indices = @transform_3, window_bounds = array<i64: 128, 128>}, {pipeline_mode = #tpu.pipeline_mode<synchronous>, transform_indices = @transform_4, window_bounds = array<i64: 1, 128>}, {transform_indices = @transform_5, window_bounds = array<i64: 1, 8, 128>}]} {
    %c0_i32 = arith.constant 0 : i32
    %0 = arith.cmpi eq, %arg1, %c0_i32 : i32
    %1 = arith.extui %0 : i1 to i32
    %c0_i32_0 = arith.constant 0 : i32
    %2 = arith.cmpi ne, %1, %c0_i32_0 : i32
    scf.if %2 {
      %cst_28 = arith.constant 0xFF800000 : f32
      %45 = vector.broadcast %cst_28 : f32 to vector<8x128xf32>
      %c0_29 = arith.constant 0 : index
      %c0_30 = arith.constant 0 : index
      %c0_31 = arith.constant 0 : index
      %46 = vector.load %arg7[%c0_29, %c0_30, %c0_31] : memref<1x8x128xf32, #tpu.memory_space<vmem>>, vector<1x8x128xf32>
      %47 = vector.shape_cast %46 : vector<1x8x128xf32> to vector<8x128xf32>
      %48 = vector.shape_cast %45 : vector<8x128xf32> to vector<1x8x128xf32>
      tpu.vector_store %arg7[%c0_29, %c0_30, %c0_31], %48 {strides = array<i32>} : memref<1x8x128xf32, #tpu.memory_space<vmem>>, vector<1x8x128xf32>,
    } else {
    }
    %c0 = arith.constant 0 : index
    %c0_1 = arith.constant 0 : index
    %3 = vector.load %arg2[%c0, %c0_1] : memref<16x8xf32, #tpu.memory_space<vmem>>, vector<16x8xf32>
    %4 = vector.extract_strided_slice %3 {offsets = [0, 7], sizes = [16, 1], strides = [1, 1]} : vector<16x8xf32> to vector<16x1xf32>
    %5 = arith.fptosi %4 : vector<16x1xf32> to vector<16x1xi32>
    %c0_2 = arith.constant 0 : index
    %c0_3 = arith.constant 0 : index
    %6 = vector.load %arg3[%c0_2, %c0_3] : memref<8x128xf32, #tpu.memory_space<vmem>>, vector<8x128xf32>
    %cst = arith.constant dense<0.000000e+00> : vector<16x128xf32>
    %7 = tpu.matmul %3, %6, %cst {dimension_numbers = #tpu.dot_dimension_numbers<[1], [0], [0], [1], [0, 0, 1, 1], [], []>} : vector<16x8xf32>, vector<8x128xf32>, vector<16x128xf32> -> vector<16x128xf32>
    %c0_4 = arith.constant 0 : index
    %c0_5 = arith.constant 0 : index
    %8 = vector.load %arg4[%c0_4, %c0_5] : memref<1x128xf32, #tpu.memory_space<vmem>>, vector<1x128xf32>
    %9 = vector.broadcast %8 : vector<1x128xf32> to vector<16x128xf32>
    %10 = arith.addf %7, %9 : vector<16x128xf32>
    %cst_6 = arith.constant 0.000000e+00 : f32
    %11 = vector.broadcast %cst_6 : f32 to vector<16x128xf32>
    %12 = arith.maximumf %10, %11 : vector<16x128xf32>
    %c0_7 = arith.constant 0 : index
    %c0_8 = arith.constant 0 : index
    %13 = vector.load %arg5[%c0_7, %c0_8] : memref<128x128xf32, #tpu.memory_space<vmem>>, vector<128x128xf32>
    %cst_9 = arith.constant dense<0.000000e+00> : vector<16x128xf32>
    %14 = tpu.matmul %12, %13, %cst_9 {dimension_numbers = #tpu.dot_dimension_numbers<[1], [0], [0], [1], [0, 0, 1, 1], [], []>} : vector<16x128xf32>, vector<128x128xf32>, vector<16x128xf32> -> vector<16x128xf32>
    %c0_10 = arith.constant 0 : index
    %c0_11 = arith.constant 0 : index
    %15 = vector.load %arg6[%c0_10, %c0_11] : memref<1x128xf32, #tpu.memory_space<vmem>>, vector<1x128xf32>
    %16 = vector.broadcast %15 : vector<1x128xf32> to vector<16x128xf32>
    %17 = arith.addf %14, %16 : vector<16x128xf32>
    %cst_12 = arith.constant 0.000000e+00 : f32
    %18 = vector.broadcast %cst_12 : f32 to vector<16x128xf32>
    %19 = arith.maximumf %17, %18 : vector<16x128xf32>
    %cst_13 = arith.constant 0xFF800000 : f32
    %20 = vector.broadcast %cst_13 : f32 to vector<16x128xf32>
    %c0_i32_14 = arith.constant 0 : i32
    %21 = vector.broadcast %c0_i32_14 : i32 to vector<16x1xi32>
    %22 = arith.cmpi eq, %5, %21 : vector<16x1xi32>
    %23 = vector.shape_cast %22 : vector<16x1xi1> to vector<16x1xi1>
    %24 = vector.broadcast %23 : vector<16x1xi1> to vector<16x128xi1>
    %25 = arith.select %24, %19, %20 : vector<16x128xi1>, vector<16x128xf32>
    %cst_15 = arith.constant dense<0xFF800000> : vector<128xf32>
    %26 = vector.multi_reduction <maximumf>, %25, %cst_15 [0] : vector<16x128xf32> to vector<128xf32>
    %c0_16 = arith.constant 0 : index
    %c0_17 = arith.constant 0 : index
    %c0_18 = arith.constant 0 : index
    %27 = vector.load %arg7[%c0_16, %c0_17, %c0_18] : memref<1x8x128xf32, #tpu.memory_space<vmem>>, vector<1x1x128xf32>
    %28 = vector.shape_cast %27 : vector<1x1x128xf32> to vector<128xf32>
    %29 = arith.maximumf %28, %26 : vector<128xf32>
    %c0_19 = arith.constant 0 : index
    %c0_20 = arith.constant 0 : index
    %c0_21 = arith.constant 0 : index
    %30 = vector.load %arg7[%c0_19, %c0_20, %c0_21] : memref<1x8x128xf32, #tpu.memory_space<vmem>>, vector<1x1x128xf32>
    %31 = vector.shape_cast %30 : vector<1x1x128xf32> to vector<128xf32>
    %32 = vector.shape_cast %29 : vector<128xf32> to vector<1x1x128xf32>
    tpu.vector_store %arg7[%c0_19, %c0_20, %c0_21], %32 {strides = array<i32>} : memref<1x8x128xf32, #tpu.memory_space<vmem>>, vector<1x1x128xf32>,
    %c1_i32 = arith.constant 1 : i32
    %33 = vector.broadcast %c1_i32 : i32 to vector<16x1xi32>
    %34 = arith.cmpi eq, %5, %33 : vector<16x1xi32>
    %35 = vector.shape_cast %34 : vector<16x1xi1> to vector<16x1xi1>
    %36 = vector.broadcast %35 : vector<16x1xi1> to vector<16x128xi1>
    %37 = arith.select %36, %19, %20 : vector<16x128xi1>, vector<16x128xf32>
    %cst_22 = arith.constant dense<0xFF800000> : vector<128xf32>
    %38 = vector.multi_reduction <maximumf>, %37, %cst_22 [0] : vector<16x128xf32> to vector<128xf32>
    %c0_23 = arith.constant 0 : index
    %c1 = arith.constant 1 : index
    %c0_24 = arith.constant 0 : index
    %39 = vector.load %arg7[%c0_23, %c1, %c0_24] : memref<1x8x128xf32, #tpu.memory_space<vmem>>, vector<1x1x128xf32>
    %40 = vector.shape_cast %39 : vector<1x1x128xf32> to vector<128xf32>
    %41 = arith.maximumf %40, %38 : vector<128xf32>
    %c0_25 = arith.constant 0 : index
    %c1_26 = arith.constant 1 : index
    %c0_27 = arith.constant 0 : index
    %42 = vector.load %arg7[%c0_25, %c1_26, %c0_27] : memref<1x8x128xf32, #tpu.memory_space<vmem>>, vector<1x1x128xf32>
    %43 = vector.shape_cast %42 : vector<1x1x128xf32> to vector<128xf32>
    %44 = vector.shape_cast %41 : vector<128xf32> to vector<1x1x128xf32>
    tpu.vector_store %arg7[%c0_25, %c1_26, %c0_27], %44 {strides = array<i32>} : memref<1x8x128xf32, #tpu.memory_space<vmem>>, vector<1x1x128xf32>,
    return
  }
  func.func @transform_0(%arg0: i32, %arg1: i32) -> (i32, i32) {
    %c1_i32 = arith.constant 1 : i32
    %0 = arith.muli %arg0, %c1_i32 : i32
    %1 = arith.addi %0, %arg1 : i32
    %c0_i32 = arith.constant 0 : i32
    %c0_i32_0 = arith.constant 0 : i32
    return %1, %c0_i32 : i32, i32
  }
  func.func @transform_1(%arg0: i32, %arg1: i32) -> (i32, i32) {
    %c0_i32 = arith.constant 0 : i32
    %c0_i32_0 = arith.constant 0 : i32
    %c0_i32_1 = arith.constant 0 : i32
    return %c0_i32, %c0_i32_0 : i32, i32
  }
  func.func @transform_2(%arg0: i32, %arg1: i32) -> (i32, i32) {
    %c0_i32 = arith.constant 0 : i32
    %c0_i32_0 = arith.constant 0 : i32
    %c0_i32_1 = arith.constant 0 : i32
    return %c0_i32, %c0_i32_0 : i32, i32
  }
  func.func @transform_3(%arg0: i32, %arg1: i32) -> (i32, i32) {
    %c0_i32 = arith.constant 0 : i32
    %c0_i32_0 = arith.constant 0 : i32
    %c0_i32_1 = arith.constant 0 : i32
    return %c0_i32, %c0_i32_0 : i32, i32
  }
  func.func @transform_4(%arg0: i32, %arg1: i32) -> (i32, i32) {
    %c0_i32 = arith.constant 0 : i32
    %c0_i32_0 = arith.constant 0 : i32
    %c0_i32_1 = arith.constant 0 : i32
    return %c0_i32, %c0_i32_0 : i32, i32
  }
  func.func @transform_5(%arg0: i32, %arg1: i32) -> (i32, i32, i32) {
    %c0_i32 = arith.constant 0 : i32
    %c0_i32_0 = arith.constant 0 : i32
    %c0_i32_1 = arith.constant 0 : i32
    return %arg0, %c0_i32, %c0_i32_0 : i32, i32, i32
  }
}

</mosaic_0001>

<bundles_post_ra>
// kernel: tpu_custom_call.1
= control target key start
LH: loop header
LB: loop body
LE: loop exit
PB: predicated region body
PF: predicated region fallthrough
CT: control target
= control target key end

     0   :  { %10 = vsyncpa [#allocation3], 0  ;;  %s561_s0 = inlined_call_operand.vmem [shape: f32[16,8], index: 0, kind: input, shape index: {}]   ;;  %s562_s1 = inlined_call_operand.vmem [shape: f32[8,128], index: 1, kind: input, shape index: {}]   ;;  %s563_s2 = inlined_call_operand.vmem [shape: f32[1,128], index: 2, kind: input, shape index: {}]   ;;  %s564_s3 = inlined_call_operand.hbm [shape: f32[128,128], index: 3, kind: input, shape index: {}]   ;;  %s565_s4 = inlined_call_operand.vmem [shape: f32[1,128], index: 4, kind: input, shape index: {}]   ;;  %s566_s5 = inlined_call_operand.hbm [shape: f32[1,8,128], index: 5, kind: output, shape index: {}]  }
   0x1   :  { %11 = vsyncpa [#allocation4], 0  ;;  %s485_s18 = smov [#allocation2]   ;;  %s437_s22 = scalar_lea.hbm %s564_s3, 2048 }
   0x2   :  { %s31_s19 = sshll.u32 %s485_s18, 4  ;;  %p438_p0 = scmp.ne.s32.totalorder %s564_s3, %s437_s22  ;;  %s32_s19 = int_to_ptr.vmem [resolvable:$true] %s31_s19 }
   0x3   :  { %p441_p1 = scmp.lt.u32.totalorder %s437_s22, %s564_s3 }
   0x5   :  { %p443_p2 = pnand %p441_p1, %p438_p0 }
   0x7   :  { %446 = shalt.err (!%p443_p2)
}
   0x8   :  { %s447_s27 = scalar_lea.vmem %s32_s19, 2048  ;;  %p452_p4 = scmp.lt.s32.totalorder %s32_s19, %s32_s19 }
   0x9   :  { %p448_p3 = scmp.ne.s32.totalorder %s32_s19, %s447_s27  ;;  %p453_p5 = scmp.lt.s32.totalorder %s447_s27, %s447_s27 }
   0xb   :  { %p454_p6 = por %p453_p5, %p452_p4 }
   0xd   :  { %p455_p7 = pnand %p454_p6, %p448_p3 }
   0xf   :  { %458 = shalt.err (!%p455_p7)
}
  0x10   :  { %s486_s28 = smov 128   ;;  %s487_s29 = smov 8  }
  0x11   :  { %37 = dma.hbm_to_vmem [thread:$0]  %s564_s3, 2048, %s32_s19, [#allocation3], %s486_s28, %s486_s28, %s487_s29  }
  0x12   :  { %481 = dma.done.wait [#allocation3], 2048  }
  0x13   :  { %482 = vsyncadd [#allocation3], 4294965248  ;;  %vm74_vm0 = vcmask 64512   ;;  %v66_v0 = vld [vmem:[%s562_s1] sm:$0xff]  ;;  %v63_v2 = vld [vmem:[%s561_s0 + $0x8] sm:$0xff]  ;;  %v488_v30 = vmov 7  }
  0x14   :  { %v62_v1 = vld [vmem:[%s561_s0] sm:$0xff]  ;;  %352 = vmatprep.subr.mxu0 %v66_v0  ;;  %v159_v4 = vld [vmem:[#allocation2 + $0x8] sm:$0xff]  ;;  %v160_v5 = vld [vmem:[#allocation2 + $0x10] sm:$0xff]  ;;  %v426_v29 = vtrunc.f32 %v63_v2  ;;  %436 = vset.pattern.permute.xlu1 %v488_v30  ;;  %v489_v31 = vmov 0   ;;  %v490_v44 = vmov -inf  }
  0x15   :  { %354 = vmatprep.mubr.msk.f32.mxu0 %vm74_vm0, %v62_v1  ;;  %v158_v3 = vld [vmem:[#allocation2] sm:$0xff]  ;;  %353 = vmatpush3.msra.mxu0 %v66_v0  ;;  %v161_v7 = vld [vmem:[#allocation2 + $0x18] sm:$0xff]  ;;  %v163_v10 = vld [vmem:[#allocation2 + $0x28] sm:$0xff]  ;;  %v424_v24 = vtrunc.f32 %v62_v1  ;;  %61 = vst [vmem:[#allocation5] sm:$0xff] %v490_v44 }
  0x16   :  { %v392_v6 = vpack.c.bf16 %v159_v4, %v158_v3  ;;  %355 = vmatmul.mubr.msk.f32.vlgmr.msra.gmra.mrb[0].mxu0 %vm74_vm0, %v63_v2  ;;  %v396_v8 = vpack.c.bf16 %v161_v7, %v160_v5  ;;  %v162_v9 = vld [vmem:[#allocation2 + $0x20] sm:$0xff]  ;;  %v164_v12 = vld [vmem:[#allocation2 + $0x30] sm:$0xff]  ;;  %v165_v13 = vld [vmem:[#allocation2 + $0x38] sm:$0xff]  ;;  %435 = vset.pattern.permute.xlu0 %v488_v30  ;;  %v427_v34 = vcvt.f32.s32 %v426_v29 }
  0x17   :  { %v400_v11 = vpack.c.bf16 %v163_v10, %v162_v9  ;;  %v404_v14 = vpack.c.bf16 %v165_v13, %v164_v12  ;;  %v166_v15 = vld [vmem:[#allocation2 + $0x40] sm:$0xff]  ;;  %v167_v16 = vld [vmem:[#allocation2 + $0x48] sm:$0xff]  ;;  %v168_v18 = vld [vmem:[#allocation2 + $0x50] sm:$0xff]  ;;  %v425_v28 = vcvt.f32.s32 %v424_v24 }
  0x18   :  { %393 = vmatprep.subr.bf16.mxu1 %v392_v6  ;;  %v408_v17 = vpack.c.bf16 %v167_v16, %v166_v15  ;;  %v169_v19 = vld [vmem:[#allocation2 + $0x58] sm:$0xff]  ;;  %v170_v21 = vld [vmem:[#allocation2 + $0x60] sm:$0xff]  ;;  %v171_v22 = vld [vmem:[#allocation2 + $0x68] sm:$0xff]  ;;  %vm283_vm3 = vcmp.eq.s32.totalorder %v427_v34, 1  ;;  %vm259_vm4 = vcmp.eq.s32.totalorder %v427_v34, 0 }
  0x19   :  { %395 = vmatpush3.bf16.msra.mxu1 %v392_v6  ;;  %v412_v20 = vpack.c.bf16 %v169_v19, %v168_v18  ;;  %v416_v23 = vpack.c.bf16 %v171_v22, %v170_v21  ;;  %v172_v25 = vld [vmem:[#allocation2 + $0x70] sm:$0xff]  ;;  %v173_v26 = vld [vmem:[#allocation2 + $0x78] sm:$0xff]  ;;  %vm282_vm1 = vcmp.eq.s32.totalorder %v425_v28, 1  ;;  %vm258_vm2 = vcmp.eq.s32.totalorder %v425_v28, 0  ;;  %v327_v37 = vld [vmem:[%s563_s2] ss:$0 sm:$0xff] }
  0x1a   :  { %397 = vmatprep.subr.bf16.mxu1 %v396_v8  ;;  %v420_v27 = vpack.c.bf16 %v173_v26, %v172_v25  ;;  %v284_v32 = vsel %vm282_vm1, 1, %v489_v31  ;;  %v260_v33 = vsel %vm258_vm2, 1, %v489_v31  ;;  %v285_v35 = vsel %vm283_vm3, 1, %v489_v31  ;;  %v330_v47 = vld [vmem:[%s565_s4] ss:$0 sm:$0xff]  ;;  %s491_s2 = smov [#allocation5]  }
  0x1b   :  { %287 = vperm.xlu1 %436, %v284_v32   ;;  %263 = vperm.xlu0 %435, %v260_v33   ;;  %v261_v36 = vsel %vm259_vm4, 1, %v489_v31  ;;  %s312_s4 = sshll.u32 %s491_s2, 4  ;;  %s313_s4 = int_to_ptr.vmem [resolvable:$true] %s312_s4 }
  0x1c   :  { %v303_v9 = vld [vmem:[#allocation5 + $0x1] sm:$0x1]  ;;  %s459_s14 = scalar_lea.vmem %s313_s4, 128  ;;  %p464_p9 = scmp.lt.s32.totalorder %s313_s4, %s313_s4 }
  0x1d   :  { %399 = vmatpush3.bf16.msra.mxu1 %v396_v8  ;;  %v279_v8 = vld [vmem:[#allocation5] sm:$0x1]  ;;  %p460_p8 = scmp.ne.s32.totalorder %s313_s4, %s459_s14  ;;  %p465_p10 = scmp.lt.s32.totalorder %s459_s14, %s459_s14 }
  0x1e   :  { %401 = vmatprep.subr.bf16.mxu1 %v400_v11 }
  0x1f   :  { %290 = vperm.xlu1 %436, %v285_v35   ;;  %266 = vperm.xlu0 %435, %v261_v36   ;;  %p466_p11 = por %p465_p10, %p464_p9 }
  0x21   :  { %403 = vmatpush3.bf16.msra.mxu1 %v400_v11  ;;  %p467_p12 = pnand %p466_p11, %p460_p8 }
  0x22   :  { %405 = vmatprep.subr.bf16.mxu1 %v404_v14 }
  0x25   :  { %407 = vmatpush3.bf16.msra.mxu1 %v404_v14 }
  0x26   :  { %409 = vmatprep.subr.bf16.mxu1 %v408_v17 }
  0x29   :  { %411 = vmatpush3.bf16.msra.mxu1 %v408_v17 }
  0x2a   :  { %413 = vmatprep.subr.bf16.mxu1 %v412_v20 }
  0x2d   :  { %415 = vmatpush3.bf16.msra.mxu1 %v412_v20 }
  0x2e   :  { %417 = vmatprep.subr.bf16.mxu1 %v416_v23 }
  0x31   :  { %419 = vmatpush3.bf16.msra.mxu1 %v416_v23 }
  0x32   :  { %421 = vmatprep.subr.bf16.mxu1 %v420_v27 }
  0x35   :  { %423 = vmatpush3.bf16.msra.mxu1 %v420_v27 }
  0x9a   :  { %v288_v45 = vpop.permute.xlu1 %287  ;;  %v264_v46 = vpop.permute.xlu0 %263 }
  0x9b   :  { %vm292_vm7 = vcmp.eq.s32.totalorder %v288_v45, 1  ;;  %vm268_vm8 = vcmp.eq.s32.totalorder %v264_v46, 1 }
  0x9e   :  { %v291_v49 = vpop.permute.xlu1 %290  ;;  %v267_v51 = vpop.permute.xlu0 %266 }
  0x9f   :  { %vm293_vm5 = vcmp.eq.s32.totalorder %v291_v49, 1  ;;  %vm269_vm6 = vcmp.eq.s32.totalorder %v267_v51, 1 }
  0xe9   :  { %v356_v38 = vpop.f32.mrb[0].mxu0 }
  0xea   :  { %v153_v39 = vadd.f32 %v356_v38, %v327_v37  ;;  %v147_v40 = vpop.f32.mrb[1].mxu0 }
  0xeb   :  { %v148_v41 = vadd.f32 %v327_v37, %v147_v40 }
  0xec   :  { %v157_v43 = vmax.f32 %v153_v39, 0.0 }
  0xed   :  { %v156_v42 = vmax.f32 %v148_v41, 0.0 }
  0xef   :  { %389 = vmatprep.mubr.f32.mxu1 %v156_v42 }
  0xf0   :  { %390 = vmatmul.mubr.f32.vlgmr.msra.gmra.mrb[0].mxu1 %v157_v43 }
 0x1c3   :  { %v391_v48 = vpop.f32.mrb[0].mxu1 }
 0x1c4   :  { %v253_v50 = vadd.f32 %v391_v48, %v330_v47  ;;  %v247_v52 = vpop.f32.mrb[1].mxu1 }
 0x1c5   :  { %v248_v53 = vadd.f32 %v330_v47, %v247_v52 }
 0x1c6   :  { %v257_v54 = vmax.f32 %v253_v50, 0.0 }
 0x1c7   :  { %v256_v55 = vmax.f32 %v248_v53, 0.0 }
 0x1c8   :  { %v295_v56 = vsel %vm293_vm5, %v257_v54, -inf  ;;  %v271_v57 = vsel %vm269_vm6, %v257_v54, -inf }
 0x1c9   :  { %v270_v58 = vsel %vm268_vm8, %v256_v55, -inf  ;;  %v294_v59 = vsel %vm292_vm7, %v256_v55, -inf }
 0x1ca   :  { %v272_v60 = vmax.f32 %v270_v58, %v271_v57  ;;  %v296_v61 = vmax.f32 %v294_v59, %v295_v56 }
 0x1cc   :  { %v273_v62 = vrot.slane %v272_v60, 4  ;;  %v297_v63 = vrot.slane %v296_v61, 4 }
 0x1ce   :  { %v274_v0 = vmax.f32 %v272_v60, %v273_v62  ;;  %v298_v1 = vmax.f32 %v296_v61, %v297_v63 }
 0x1d0   :  { %v275_v2 = vrot.slane %v274_v0, 2  ;;  %v299_v3 = vrot.slane %v298_v1, 2 }
 0x1d2   :  { %v276_v4 = vmax.f32 %v274_v0, %v275_v2  ;;  %v300_v5 = vmax.f32 %v298_v1, %v299_v3 }
 0x1d4   :  { %v277_v6 = vrot.slane %v276_v4, 1  ;;  %v301_v7 = vrot.slane %v300_v5, 1 }
 0x1d6   :  { %v278_v10 = vmax.f32 %v276_v4, %v277_v6  ;;  %v302_v11 = vmax.f32 %v300_v5, %v301_v7 }
 0x1d8   :  { %v280_v12 = vmax.f32 %v279_v8, %v278_v10  ;;  %v304_v13 = vmax.f32 %v303_v9, %v302_v11 }
 0x1da   :  { %281 = vst [vmem:[#allocation5] sm:$0x1] %v280_v12  ;;  %305 = vst [vmem:[#allocation5 + $0x1] sm:$0x1] %v304_v13 }
 0x1db   :  { %470 = shalt.err (!%p467_p12)
}
 0x1dc   :  { %s471_s17 = scalar_lea.hbm %s566_s5, 128 }
 0x1dd   :  { %p472_p13 = scmp.ne.s32.totalorder %s566_s5, %s471_s17  ;;  %p475_p0 = scmp.lt.u32.totalorder %s471_s17, %s566_s5 }
 0x1df   :  { %p477_p1 = pnand %p475_p0, %p472_p13 }
 0x1e1   :  { %480 = shalt.err (!%p477_p1)
}
 0x1e2   :  { %315 = dma.vmem_to_hbm [thread:$0]  %s313_s4, 128, %s566_s5, [#allocation4]  }
 0x1e3   :  { %483 = dma.done.wait [#allocation4], 128  }
 0x1e4   :  { %484 = vsyncadd [#allocation4], 4294967168 }
 0x1e5   :  { %319 = vsyncpa [#allocation3], 1 }
 0x1e6   :  { %320 = vsyncpa [#allocation4], 1 }

</bundles_post_ra>
